<compile_context>
chip_gen: v5e
topology: v5e:2x2
jax: 0.10.0
libtpu: 0.0.40
codegen_flags: <defaults>
</compile_context>

<pallas_src>
import functools

import jax
import jax.numpy as jnp
from jax.experimental import pallas as pl
from jax.experimental.pallas import tpu as pltpu


_SQRT_2_OVER_PI = 0.7978845608028654


def _gelu_new(x):
    # 0.5 * x * (1 + tanh(sqrt(2/pi) * (x + 0.044715 * x^3)))
    return 0.5 * x * (1.0 + jnp.tanh(_SQRT_2_OVER_PI * (x + 0.044715 * x * x * x)))


def _round_up(x, m):
    return ((x + m - 1) // m) * m


# ----------------------------- hardware probing ------------------------------


def _tpu_generation():
    try:
        kind = jax.devices()[0].device_kind.lower()
    except Exception:
        return "unknown"
    if "v5 lite" in kind or "v5e" in kind or "v5lite" in kind:
        return "v5e"
    if "v6" in kind:
        return "v6e"
    if "v7" in kind or "7x" in kind:
        return "v7x"
    return "unknown"


def _vmem_capacity_bytes(gen):
    try:
        info = pltpu.get_tpu_info()
        cap = getattr(info, "vmem_capacity_bytes", None)
        if cap:
            return int(cap)
    except Exception:
        pass
    # Conservative fallbacks: 64 MiB per TensorCore on v7x, 128 MiB elsewhere.
    return (64 << 20) if gen == "v7x" else (128 << 20)


def _default_tiles(gen):
    # (tm, tk_ff) defaults per generation (see perf review / roofline notes).
    if gen == "v6e":
        return 1024, 512
    if gen == "v7x":
        return 512, 256
    if gen == "v5e":
        return 256, 512
    return 512, 512


def _tk_candidates(d_ff_128, tk_max):
    """128-multiples that evenly divide d_ff_128, no larger than tk_max, ascending."""
    m = d_ff_128 // 128
    cands = sorted({(m // n) * 128 for n in range(1, m + 1) if m % n == 0})
    cands = [c for c in cands if c <= max(tk_max, 128)]
    return cands if cands else [128]


def _block_bytes(tm, tk, d_model, isz_x, isz_c):
    """Rough (generous) VMEM footprint of one grid step with double-buffering."""
    return (
        2 * tm * d_model * isz_x        # x tile (double-buffered input)
        + 2 * tm * d_model * isz_x      # output tile (double-buffered)
        + 2 * d_model * tk * isz_c      # wi0 tile
        + 2 * d_model * tk * isz_c      # wi1 tile
        + 2 * tk * d_model * isz_c      # wo tile
        + tm * d_model * 4              # f32 accumulator scratch
        + tm * d_model * isz_c          # normed-activation scratch
        + 4 * tm * tk * 4               # h0 / h1 / hh / gelu temps (f32, rough)
        + (2 << 20)                     # Mosaic internal scratch headroom
    )


# --------------------------------- kernel ------------------------------------


def _t5_layer_ff_kernel(x_ref, ln_w_ref, wi0_ref, wi1_ref, wo_ref, o_ref,
                        normed_ref, acc_ref, *, eps):
    """Grid: (token_tiles, d_ff_tiles). d_ff is the (last, 'arbitrary') reduction axis."""
    k = pl.program_id(1)

    @pl.when(k == 0)
    def _init():
        # --- T5LayerNorm (RMS norm, fp32 variance, no mean subtraction) ---
        x = x_ref[...].astype(jnp.float32)
        variance = jnp.mean(x * x, axis=-1, keepdims=True)
        normed = x * jax.lax.rsqrt(variance + eps)
        normed = ln_w_ref[...].astype(jnp.float32) * normed
        normed_ref[...] = normed.astype(normed_ref.dtype)
        acc_ref[...] = jnp.zeros_like(acc_ref)

    # --- T5DenseGatedGeluDense, one d_ff slab per grid step ---
    normed = normed_ref[...]
    h0 = jnp.dot(normed, wi0_ref[...], preferred_element_type=jnp.float32)
    h1 = jnp.dot(normed, wi1_ref[...], preferred_element_type=jnp.float32)
    hh = _gelu_new(h0) * h1
    # TODO(synk): dropout omitted (identity in eval mode).
    acc_ref[...] += jnp.dot(hh.astype(wo_ref.dtype), wo_ref[...],
                            preferred_element_type=jnp.float32)

    @pl.when(k == pl.num_programs(1) - 1)
    def _finalize():
        # --- residual add ---
        o_ref[...] = (x_ref[...].astype(jnp.float32) + acc_ref[...]).astype(o_ref.dtype)


# -------------------------------- wrapper -------------------------------------


def t5_layer_ff(x, ln_weight, wi0, wi1, wo, *, eps=1e-6, tm=None, tk_ff=None,
                compute_dtype=jnp.bfloat16):
    """T5LayerFF forward.

    x: (B, S, d_model). wi0/wi1: (d_model, d_ff). wo: (d_ff, d_model)
    (nn.Linear weights pre-transposed to (in, out)).
    compute_dtype: dtype fed to the MXU (default bf16 for full-rate MXU and
    half the weight HBM traffic; store weights in bf16 to avoid a per-call
    cast). LN math and the accumulator stay fp32.
    """
    B, S, d_model = x.shape
    d_ff = wi0.shape[1]
    tokens = B * S

    compute_dtype = jnp.dtype(compute_dtype)
    gen = _tpu_generation()
    vmem_cap = _vmem_capacity_bytes(gen)
    def_tm, def_tk = _default_tiles(gen)
    if tm is None:
        tm = def_tm
    if tk_ff is None:
        tk_ff = def_tk

    # --- d_ff tiling: 128-aligned tile that evenly divides round_up(d_ff, 128) ---
    d_ff_128 = _round_up(d_ff, 128)
    tk_cands = _tk_candidates(d_ff_128, tk_ff)
    ci = len(tk_cands) - 1
    tk_eff = tk_cands[ci]

    # --- token tiling (pad token count so the tile divides it) ---
    tm_eff = max(8, (min(tm, _round_up(tokens, 8)) // 8) * 8)
    tokens_pad = _round_up(tokens, tm_eff)

    # v7x has 2 TensorCores: make sure the 'parallel' token axis has >= 2 tiles.
    if gen == "v7x":
        while tokens_pad // tm_eff < 2 and tm_eff > 8:
            tm_eff = max(8, _round_up(tm_eff // 2, 8))
            tokens_pad = _round_up(tokens, tm_eff)

    # --- shrink tiles until the footprint fits the per-core VMEM budget ---
    isz_x = jnp.dtype(x.dtype).itemsize
    isz_c = compute_dtype.itemsize
    budget = int(0.85 * vmem_cap)
    while _block_bytes(tm_eff, tk_eff, d_model, isz_x, isz_c) > budget:
        if ci > 0:
            ci -= 1
            tk_eff = tk_cands[ci]
        elif tm_eff > 8:
            tm_eff = max(8, _round_up(tm_eff // 2, 8))
            tokens_pad = _round_up(tokens, tm_eff)
        else:
            break
    nk = d_ff_128 // tk_eff

    # --- prep operands (no per-call concat; astype is a no-op for bf16 weights) ---
    x2 = x.reshape(tokens, d_model)
    if tokens_pad != tokens:
        x2 = jnp.pad(x2, ((0, tokens_pad - tokens), (0, 0)))
    ln_w2 = ln_weight.reshape(1, d_model)

    wi0c = wi0.astype(compute_dtype)
    wi1c = wi1.astype(compute_dtype)
    woc = wo.astype(compute_dtype)
    if d_ff_128 != d_ff:
        pad_ff = d_ff_128 - d_ff
        wi0c = jnp.pad(wi0c, ((0, 0), (0, pad_ff)))
        wi1c = jnp.pad(wi1c, ((0, 0), (0, pad_ff)))
        woc = jnp.pad(woc, ((0, pad_ff), (0, 0)))

    block_bytes = _block_bytes(tm_eff, tk_eff, d_model, isz_x, isz_c)
    vmem_limit = int(min(max(int(block_bytes * 1.25), 32 * 1024 * 1024),
                         int(0.9 * vmem_cap)))

    out = pl.pallas_call(
        functools.partial(_t5_layer_ff_kernel, eps=eps),
        out_shape=jax.ShapeDtypeStruct((tokens_pad, d_model), x.dtype),
        grid_spec=pltpu.PrefetchScalarGridSpec(
            num_scalar_prefetch=0,
            grid=(tokens_pad // tm_eff, nk),
            in_specs=[
                pl.BlockSpec((tm_eff, d_model), lambda i, k: (i, 0)),     # x tile
                pl.BlockSpec((1, d_model), lambda i, k: (0, 0)),          # ln weight
                pl.BlockSpec((d_model, tk_eff), lambda i, k: (0, k)),     # wi0 slab
                pl.BlockSpec((d_model, tk_eff), lambda i, k: (0, k)),     # wi1 slab
                pl.BlockSpec((tk_eff, d_model), lambda i, k: (k, 0)),     # wo slab
            ],
            out_specs=pl.BlockSpec((tm_eff, d_model), lambda i, k: (i, 0)),
            scratch_shapes=[
                pltpu.VMEM((tm_eff, d_model), compute_dtype),  # normed activations
                pltpu.VMEM((tm_eff, d_model), jnp.float32),    # f32 accumulator
            ],
        ),
        compiler_params=pltpu.CompilerParams(
            dimension_semantics=("parallel", "arbitrary"),
            vmem_limit_bytes=vmem_limit,
        ),
    )(x2, ln_w2, wi0c, wi1c, woc)

    return out[:tokens].reshape(B, S, d_model)


# ------------------------------- reference ------------------------------------


def t5_layer_ff_reference(x, ln_weight, wi0, wi1, wo, *, eps=1e-6):
    xf = x.astype(jnp.float32)
    var = jnp.mean(xf * xf, axis=-1, keepdims=True)
    normed = ln_weight * (xf * jax.lax.rsqrt(var + eps))
    h = _gelu_new(normed @ wi0) * (normed @ wi1)
    return x + h @ wo


if __name__ == "__main__":
    B, S, d_model, d_ff = 2, 8, 128, 256   # small but lane-aligned shapes
    key = jax.random.PRNGKey(0)
    kx, k0, k1, k2 = jax.random.split(key, 4)

    x = jax.random.normal(kx, (B, S, d_model), dtype=jnp.float32)

    # Deterministic parameters. nn.Linear weights are (out, in); here they are
    # already transposed to (in, out) so the kernel does plain x @ W.
    ln_weight = jnp.ones((d_model,), dtype=jnp.float32)  # T5LayerNorm init
    wi0 = jax.random.normal(k0, (d_model, d_ff), dtype=jnp.float32) * 0.05
    wi1 = jax.random.normal(k1, (d_model, d_ff), dtype=jnp.float32) * 0.05
    wo = jax.random.normal(k2, (d_ff, d_model), dtype=jnp.float32) * 0.05

    ref = t5_layer_ff_reference(x, ln_weight, wi0, wi1, wo, eps=1e-6)

    # 1) f32 compute, per-generation default tiles — tight tolerance
    out = jax.block_until_ready(
        t5_layer_ff(x, ln_weight, wi0, wi1, wo, eps=1e-6, compute_dtype=jnp.float32))
    assert out.shape == (B, S, d_model)
    assert jnp.allclose(out, ref, atol=1e-4, rtol=1e-4), "mismatch (default tiles)"

    # 2) f32 compute, forced multi-tile grid (2 token tiles x 2 d_ff tiles) to
    #    exercise the pipelined d_ff reduction + accumulator path
    out2 = jax.block_until_ready(
        t5_layer_ff(x, ln_weight, wi0, wi1, wo, eps=1e-6, tm=8, tk_ff=128,
                    compute_dtype=jnp.float32))
    assert jnp.allclose(out2, ref, atol=1e-4, rtol=1e-4), "mismatch (tiled reduction)"

    # 3) default production path: bf16 compute (full-rate MXU), loose tolerance
    out3 = jax.block_until_ready(t5_layer_ff(x, ln_weight, wi0, wi1, wo, eps=1e-6))
    assert jnp.allclose(out3, ref, atol=5e-2, rtol=5e-2), "mismatch (bf16 compute)"

    # 4) non-128-multiple d_ff: exercises zero-padding of the reduction axis
    d_ff2 = 192
    wi0b = jax.random.normal(k0, (d_model, d_ff2), dtype=jnp.float32) * 0.05
    wi1b = jax.random.normal(k1, (d_model, d_ff2), dtype=jnp.float32) * 0.05
    wob = jax.random.normal(k2, (d_ff2, d_model), dtype=jnp.float32) * 0.05
    refb = t5_layer_ff_reference(x, ln_weight, wi0b, wi1b, wob, eps=1e-6)
    outb = jax.block_until_ready(
        t5_layer_ff(x, ln_weight, wi0b, wi1b, wob, eps=1e-6, tk_ff=128,
                    compute_dtype=jnp.float32))
    assert jnp.allclose(outb, refb, atol=1e-4, rtol=1e-4), "mismatch (padded d_ff)"

    print("KERNEL_OK")
</pallas_src>

<mosaic_0001>
module attributes {stable_mosaic.version = 11 : i64} {
  func.func @_t5_layer_ff_kernel(%arg0: i32, %arg1: i32, %arg2: memref<16x128xf32, #tpu.memory_space<vmem>>, %arg3: memref<1x128xf32, #tpu.memory_space<vmem>>, %arg4: memref<128x256xf32, #tpu.memory_space<vmem>>, %arg5: memref<128x256xf32, #tpu.memory_space<vmem>>, %arg6: memref<256x128xf32, #tpu.memory_space<vmem>>, %arg7: memref<16x128xf32, #tpu.memory_space<vmem>>, %arg8: memref<16x128xf32, #tpu.memory_space<vmem>>, %arg9: memref<16x128xf32, #tpu.memory_space<vmem>>) attributes {dimension_semantics = [#tpu.dimension_semantics<parallel>, #tpu.dimension_semantics<arbitrary>], iteration_bounds = array<i64: 1, 1>, scalar_prefetch = 0 : i64, scratch_operands = 2 : i64, tpu.core_type = #tpu.core_type<tc>, window_params = [{transform_indices = @transform_0, window_bounds = array<i64: 16, 128>}, {pipeline_mode = #tpu.pipeline_mode<synchronous>, transform_indices = @transform_1, window_bounds = array<i64: 1, 128>}, {transform_indices = @transform_2, window_bounds = array<i64: 128, 256>}, {transform_indices = @transform_3, window_bounds = array<i64: 128, 256>}, {transform_indices = @transform_4, window_bounds = array<i64: 256, 128>}, {transform_indices = @transform_5, window_bounds = array<i64: 16, 128>}]} {
    %c0_i32 = arith.constant 0 : i32
    %0 = arith.cmpi eq, %arg1, %c0_i32 : i32
    %1 = arith.extui %0 : i1 to i32
    %c0_i32_0 = arith.constant 0 : i32
    %2 = arith.cmpi ne, %1, %c0_i32_0 : i32
    scf.if %2 {
      %c0_20 = arith.constant 0 : index
      %c0_21 = arith.constant 0 : index
      %30 = vector.load %arg2[%c0_20, %c0_21] : memref<16x128xf32, #tpu.memory_space<vmem>>, vector<16x128xf32>
      %31 = arith.mulf %30, %30 : vector<16x128xf32>
      %cst_22 = arith.constant dense<0.000000e+00> : vector<16xf32>
      %32 = vector.multi_reduction <add>, %31, %cst_22 [1] : vector<16x128xf32> to vector<16xf32>
      %33 = vector.shape_cast %32 : vector<16xf32> to vector<16x1xf32>
      %cst_23 = arith.constant 1.280000e+02 : f32
      %34 = vector.broadcast %cst_23 : f32 to vector<16x1xf32>
      %35 = arith.divf %33, %34 : vector<16x1xf32>
      %cst_24 = arith.constant 9.99999997E-7 : f32
      %36 = vector.broadcast %cst_24 : f32 to vector<16x1xf32>
      %37 = arith.addf %35, %36 : vector<16x1xf32>
      %38 = math.rsqrt %37 : vector<16x1xf32>
      %39 = vector.broadcast %38 : vector<16x1xf32> to vector<16x128xf32>
      %40 = arith.mulf %30, %39 : vector<16x128xf32>
      %c0_25 = arith.constant 0 : index
      %c0_26 = arith.constant 0 : index
      %41 = vector.load %arg3[%c0_25, %c0_26] : memref<1x128xf32, #tpu.memory_space<vmem>>, vector<1x128xf32>
      %42 = vector.broadcast %41 : vector<1x128xf32> to vector<16x128xf32>
      %43 = arith.mulf %42, %40 : vector<16x128xf32>
      %c0_27 = arith.constant 0 : index
      %c0_28 = arith.constant 0 : index
      %44 = vector.load %arg8[%c0_27, %c0_28] : memref<16x128xf32, #tpu.memory_space<vmem>>, vector<16x128xf32>
      tpu.vector_store %arg8[%c0_27, %c0_28], %43 {strides = array<i32>} : memref<16x128xf32, #tpu.memory_space<vmem>>, vector<16x128xf32>,
      %cst_29 = arith.constant 0.000000e+00 : f32
      %45 = vector.broadcast %cst_29 : f32 to vector<16x128xf32>
      %c0_30 = arith.constant 0 : index
      %c0_31 = arith.constant 0 : index
      %46 = vector.load %arg9[%c0_30, %c0_31] : memref<16x128xf32, #tpu.memory_space<vmem>>, vector<16x128xf32>
      tpu.vector_store %arg9[%c0_30, %c0_31], %45 {strides = array<i32>} : memref<16x128xf32, #tpu.memory_space<vmem>>, vector<16x128xf32>,
    } else {
    }
    %c0 = arith.constant 0 : index
    %c0_1 = arith.constant 0 : index
    %3 = vector.load %arg8[%c0, %c0_1] : memref<16x128xf32, #tpu.memory_space<vmem>>, vector<16x128xf32>
    %c0_2 = arith.constant 0 : index
    %c0_3 = arith.constant 0 : index
    %4 = vector.load %arg4[%c0_2, %c0_3] : memref<128x256xf32, #tpu.memory_space<vmem>>, vector<128x256xf32>
    %cst = arith.constant dense<0.000000e+00> : vector<16x256xf32>
    %5 = tpu.matmul %3, %4, %cst {dimension_numbers = #tpu.dot_dimension_numbers<[1], [0], [0], [1], [0, 0, 1, 1], [], []>} : vector<16x128xf32>, vector<128x256xf32>, vector<16x256xf32> -> vector<16x256xf32>
    %c0_4 = arith.constant 0 : index
    %c0_5 = arith.constant 0 : index
    %6 = vector.load %arg5[%c0_4, %c0_5] : memref<128x256xf32, #tpu.memory_space<vmem>>, vector<128x256xf32>
    %cst_6 = arith.constant dense<0.000000e+00> : vector<16x256xf32>
    %7 = tpu.matmul %3, %6, %cst_6 {dimension_numbers = #tpu.dot_dimension_numbers<[1], [0], [0], [1], [0, 0, 1, 1], [], []>} : vector<16x128xf32>, vector<128x256xf32>, vector<16x256xf32> -> vector<16x256xf32>
    %cst_7 = arith.constant 5.000000e-01 : f32
    %8 = vector.broadcast %cst_7 : f32 to vector<16x256xf32>
    %9 = arith.mulf %8, %5 : vector<16x256xf32>
    %cst_8 = arith.constant 4.471500e-02 : f32
    %10 = vector.broadcast %cst_8 : f32 to vector<16x256xf32>
    %11 = arith.mulf %10, %5 : vector<16x256xf32>
    %12 = arith.mulf %11, %5 : vector<16x256xf32>
    %13 = arith.mulf %12, %5 : vector<16x256xf32>
    %14 = arith.addf %5, %13 : vector<16x256xf32>
    %cst_9 = arith.constant 0.797884583 : f32
    %15 = vector.broadcast %cst_9 : f32 to vector<16x256xf32>
    %16 = arith.mulf %15, %14 : vector<16x256xf32>
    %17 = math.tanh %16 : vector<16x256xf32>
    %cst_10 = arith.constant 1.000000e+00 : f32
    %18 = vector.broadcast %cst_10 : f32 to vector<16x256xf32>
    %19 = arith.addf %18, %17 : vector<16x256xf32>
    %20 = arith.mulf %9, %19 : vector<16x256xf32>
    %21 = arith.mulf %20, %7 : vector<16x256xf32>
    %c0_11 = arith.constant 0 : index
    %c0_12 = arith.constant 0 : index
    %22 = vector.load %arg9[%c0_11, %c0_12] : memref<16x128xf32, #tpu.memory_space<vmem>>, vector<16x128xf32>
    %c0_13 = arith.constant 0 : index
    %c0_14 = arith.constant 0 : index
    %23 = vector.load %arg6[%c0_13, %c0_14] : memref<256x128xf32, #tpu.memory_space<vmem>>, vector<256x128xf32>
    %cst_15 = arith.constant dense<0.000000e+00> : vector<16x128xf32>
    %24 = tpu.matmul %21, %23, %cst_15 {dimension_numbers = #tpu.dot_dimension_numbers<[1], [0], [0], [1], [0, 0, 1, 1], [], []>} : vector<16x256xf32>, vector<256x128xf32>, vector<16x128xf32> -> vector<16x128xf32>
    %25 = arith.addf %22, %24 : vector<16x128xf32>
    %c0_16 = arith.constant 0 : index
    %c0_17 = arith.constant 0 : index
    %26 = vector.load %arg9[%c0_16, %c0_17] : memref<16x128xf32, #tpu.memory_space<vmem>>, vector<16x128xf32>
    tpu.vector_store %arg9[%c0_16, %c0_17], %25 {strides = array<i32>} : memref<16x128xf32, #tpu.memory_space<vmem>>, vector<16x128xf32>,
    %c0_i32_18 = arith.constant 0 : i32
    %27 = arith.cmpi eq, %arg1, %c0_i32_18 : i32
    %28 = arith.extui %27 : i1 to i32
    %c0_i32_19 = arith.constant 0 : i32
    %29 = arith.cmpi ne, %28, %c0_i32_19 : i32
    scf.if %29 {
      %c0_20 = arith.constant 0 : index
      %c0_21 = arith.constant 0 : index
      %30 = vector.load %arg2[%c0_20, %c0_21] : memref<16x128xf32, #tpu.memory_space<vmem>>, vector<16x128xf32>
      %c0_22 = arith.constant 0 : index
      %c0_23 = arith.constant 0 : index
      %31 = vector.load %arg9[%c0_22, %c0_23] : memref<16x128xf32, #tpu.memory_space<vmem>>, vector<16x128xf32>
      %32 = arith.addf %30, %31 : vector<16x128xf32>
      %c0_24 = arith.constant 0 : index
      %c0_25 = arith.constant 0 : index
      %33 = vector.load %arg7[%c0_24, %c0_25] : memref<16x128xf32, #tpu.memory_space<vmem>>, vector<16x128xf32>
      tpu.vector_store %arg7[%c0_24, %c0_25], %32 {strides = array<i32>} : memref<16x128xf32, #tpu.memory_space<vmem>>, vector<16x128xf32>,
    } else {
    }
    return
  }
  func.func @transform_0(%arg0: i32, %arg1: i32) -> (i32, i32) {
    %c0_i32 = arith.constant 0 : i32
    %c0_i32_0 = arith.constant 0 : i32
    return %arg0, %c0_i32 : i32, i32
  }
  func.func @transform_1(%arg0: i32, %arg1: i32) -> (i32, i32) {
    %c0_i32 = arith.constant 0 : i32
    %c0_i32_0 = arith.constant 0 : i32
    %c0_i32_1 = arith.constant 0 : i32
    return %c0_i32, %c0_i32_0 : i32, i32
  }
  func.func @transform_2(%arg0: i32, %arg1: i32) -> (i32, i32) {
    %c0_i32 = arith.constant 0 : i32
    %c0_i32_0 = arith.constant 0 : i32
    return %c0_i32, %arg1 : i32, i32
  }
  func.func @transform_3(%arg0: i32, %arg1: i32) -> (i32, i32) {
    %c0_i32 = arith.constant 0 : i32
    %c0_i32_0 = arith.constant 0 : i32
    return %c0_i32, %arg1 : i32, i32
  }
  func.func @transform_4(%arg0: i32, %arg1: i32) -> (i32, i32) {
    %c0_i32 = arith.constant 0 : i32
    %c0_i32_0 = arith.constant 0 : i32
    return %arg1, %c0_i32 : i32, i32
  }
  func.func @transform_5(%arg0: i32, %arg1: i32) -> (i32, i32) {
    %c0_i32 = arith.constant 0 : i32
    %c0_i32_0 = arith.constant 0 : i32
    return %arg0, %c0_i32 : i32, i32
  }
}

</mosaic_0001>

<bundles_post_ra>
// kernel: tpu_custom_call.1
= control target key start
LH: loop header
LB: loop body
LE: loop exit
PB: predicated region body
PF: predicated region fallthrough
CT: control target
= control target key end

     0   :  { %10 = vsyncpa [#allocation5], 0  ;;  %s763_s0 = inlined_call_operand.hbm [shape: f32[16,128], index: 0, kind: input, shape index: {}]   ;;  %s764_s1 = inlined_call_operand.hbm [shape: f32[1,128], index: 1, kind: input, shape index: {}]   ;;  %s765_s2 = inlined_call_operand.hbm [shape: f32[128,256], index: 2, kind: input, shape index: {}]   ;;  %s766_s3 = inlined_call_operand.hbm [shape: f32[128,256], index: 3, kind: input, shape index: {}]   ;;  %s767_s4 = inlined_call_operand.hbm [shape: f32[256,128], index: 4, kind: input, shape index: {}]   ;;  %s768_s5 = inlined_call_operand.hbm [shape: f32[16,128], index: 5, kind: output, shape index: {}]  }
   0x1   :  { %11 = vsyncpa [#allocation8], 0 }
   0x2   :  { %12 = vsyncpa [#allocation11], 0  ;;  %s32_s20 = sshll.u32 %s764_s1, 4  ;;  %s33_s20 = int_to_ptr.hbm [resolvable:$true] %s32_s20 }
   0x3   :  { %13 = vsyncpa [#allocation6], 0  ;;  %s676_s21 = smov [#allocation7]   ;;  %s55_s25 = sshll.u32 %s766_s3, 4  ;;  %s56_s25 = int_to_ptr.hbm [resolvable:$true] %s55_s25 }
   0x4   :  { %s34_s22 = sshll.u32 %s676_s21, 4  ;;  %s677_s26 = smov [#allocation10]   ;;  %s35_s22 = int_to_ptr.vmem [resolvable:$true] %s34_s22 }
   0x5   :  { %37 = dma.hbm_to_vmem [thread:$0]  %s33_s20, 16, %s35_s22, [#allocation8]  }
   0x6   :  { %s57_s27 = sshll.u32 %s677_s26, 4  ;;  %s18_s30 = sshll.u32 %s763_s0, 4  ;;  %s58_s27 = int_to_ptr.vmem [resolvable:$true] %s57_s27  ;;  %s19_s30 = int_to_ptr.hbm [resolvable:$true] %s18_s30 }
   0x7   :  { %s678_s1 = smov 256   ;;  %s679_s6 = smov 16  }
   0x8   :  { %63 = dma.hbm_to_vmem [thread:$0]  %s56_s25, 4096, %s58_s27, [#allocation11], %s678_s1, %s678_s1, %s679_s6  }
   0x9   :  { %s680_s7 = smov [#allocation4]   ;;  %s42_s11 = sshll.u32 %s765_s2, 4  ;;  %s43_s11 = int_to_ptr.hbm [resolvable:$true] %s42_s11 }
   0xa   :  { %s20_s8 = sshll.u32 %s680_s7, 4  ;;  %s681_s3 = smov 128   ;;  %s21_s8 = int_to_ptr.vmem [resolvable:$true] %s20_s8 }
   0xb   :  { %s682_s12 = smov 8   ;;  %s683_s0 = smov [#allocation9]  }
   0xc   :  { %26 = dma.hbm_to_vmem [thread:$0]  %s19_s30, 256, %s21_s8, [#allocation5], %s681_s3, %s681_s3, %s682_s12  }
   0xd   :  { %s44_s13 = sshll.u32 %s683_s0, 4  ;;  %s68_s16 = sshll.u32 %s767_s4, 4  ;;  %s45_s13 = int_to_ptr.vmem [resolvable:$true] %s44_s13  ;;  %s69_s16 = int_to_ptr.hbm [resolvable:$true] %s68_s16 }
   0xe   :  { %50 = dma.hbm_to_vmem [thread:$0]  %s43_s11, 4096, %s45_s13, [#allocation8], %s678_s1, %s678_s1, %s679_s6  }
   0xf   :  { %s684_s17 = smov [#allocation12]  }
  0x10   :  { %s70_s18 = sshll.u32 %s684_s17, 4  ;;  %s71_s18 = int_to_ptr.vmem [resolvable:$true] %s70_s18 }
  0x11   :  { %76 = dma.hbm_to_vmem [thread:$0]  %s69_s16, 4096, %s71_s18, [#allocation11], %s681_s3, %s681_s3, %s682_s12  }
  0x12   :  { %668 = dma.done.wait [#allocation5], 256  }
  0x13   :  { %669 = vsyncadd [#allocation5], 4294967040 }
  0x14   :  { %670 = dma.done.wait [#allocation8], 4112  }
  0x15   :  { %671 = vsyncadd [#allocation8], 4294963184 }
  0x16   :  { %672 = dma.done.wait [#allocation11], 8192  }
  0x17   :  { %673 = vsyncadd [#allocation11], 4294959104  ;;  %v738_v0 = vld [vmem:[#allocation4] sm:$0xff]  ;;  %v185_v3 = vld [vmem:[#allocation9 + $0xf8] sm:$0xff]  ;;  %v685_v24 = vmov 128.0   ;;  %s686_s2 = smov [#allocation13]  }
  0x18   :  { %v184_v1 = vld [vmem:[#allocation9 + $0xf0] sm:$0xff]  ;;  %v103_v2 = vmul.f32 %v738_v0, %v738_v0  ;;  %v263_v5 = vld [vmem:[#allocation10 + $0xf8] sm:$0xff]  ;;  %209 = vmatpush.msra.mxu1 %v185_v3  ;;  %v182_v7 = vld [vmem:[#allocation9 + $0xe0] sm:$0xff]  ;;  %510 = vrcp.f32 %v685_v24  ;;  %s449_s4 = sshll.u32 %s686_s2, 4  ;;  %s451_s21 = sshll.u32 %s768_s5, 4  ;;  %s450_s4 = int_to_ptr.vmem [resolvable:$true] %s449_s4  ;;  %s452_s21 = int_to_ptr.hbm [resolvable:$true] %s451_s21 }
  0x19   :  { %186 = vmatpush.msra.mxu0 %v184_v1  ;;  %v262_v4 = vld [vmem:[#allocation10 + $0xf0] sm:$0xff]  ;;  %v183_v8 = vld [vmem:[#allocation9 + $0xe8] sm:$0xff]  ;;  %v260_v9 = vld [vmem:[#allocation10 + $0xe0] sm:$0xff]  ;;  %287 = vmatpush.msra.mxu3 %v263_v5 }
  0x1a   :  { %v742_v6 = vld [vmem:[#allocation4 + $0x8] sm:$0xff]  ;;  %264 = vmatpush.msra.mxu2 %v262_v4  ;;  %105 = vadd.xlane.f32.xlu0 %v103_v2  ;;  %v261_v10 = vld [vmem:[#allocation10 + $0xe8] sm:$0xff]  ;;  %v178_v16 = vld [vmem:[#allocation9 + $0xc0] sm:$0xff] }
  0x1b   :  { %v180_v11 = vld [vmem:[#allocation9 + $0xd0] sm:$0xff]  ;;  %v181_v12 = vld [vmem:[#allocation9 + $0xd8] sm:$0xff]  ;;  %187 = vmatpush.msra.mxu0 %v182_v7  ;;  %210 = vmatpush.msra.mxu1 %v183_v8  ;;  %v104_v15 = vmul.f32 %v742_v6, %v742_v6  ;;  %v179_v17 = vld [vmem:[#allocation9 + $0xc8] sm:$0xff] }
  0x1c   :  { %v258_v13 = vld [vmem:[#allocation10 + $0xd0] sm:$0xff]  ;;  %v259_v14 = vld [vmem:[#allocation10 + $0xd8] sm:$0xff]  ;;  %265 = vmatpush.msra.mxu2 %v260_v9  ;;  %288 = vmatpush.msra.mxu3 %v261_v10  ;;  %v256_v18 = vld [vmem:[#allocation10 + $0xc0] sm:$0xff] }
  0x1d   :  { %188 = vmatpush.msra.mxu0 %v180_v11  ;;  %211 = vmatpush.msra.mxu1 %v181_v12  ;;  %v257_v19 = vld [vmem:[#allocation10 + $0xc8] sm:$0xff]  ;;  %v176_v20 = vld [vmem:[#allocation9 + $0xb0] sm:$0xff]  ;;  %v177_v21 = vld [vmem:[#allocation9 + $0xb8] sm:$0xff] }
  0x1e   :  { %266 = vmatpush.msra.mxu2 %v258_v13  ;;  %289 = vmatpush.msra.mxu3 %v259_v14  ;;  %v254_v22 = vld [vmem:[#allocation10 + $0xb0] sm:$0xff]  ;;  %v255_v23 = vld [vmem:[#allocation10 + $0xb8] sm:$0xff]  ;;  %v174_v25 = vld [vmem:[#allocation9 + $0xa0] sm:$0xff]  ;;  %v746_v37 = vpop.eup %510 }
  0x1f   :  { %189 = vmatpush.msra.mxu0 %v178_v16  ;;  %212 = vmatpush.msra.mxu1 %v179_v17  ;;  %v175_v26 = vld [vmem:[#allocation9 + $0xa8] sm:$0xff]  ;;  %v252_v27 = vld [vmem:[#allocation10 + $0xa0] sm:$0xff]  ;;  %v172_v29 = vld [vmem:[#allocation9 + $0x90] sm:$0xff]  ;;  %v110_v45 = vmul.f32 128.0, %v746_v37  ;;  %vm114_vm0 = vweird.f32 %v746_v37 }
  0x20   :  { %267 = vmatpush.msra.mxu2 %v256_v18  ;;  %290 = vmatpush.msra.mxu3 %v257_v19  ;;  %v253_v28 = vld [vmem:[#allocation10 + $0xa8] sm:$0xff]  ;;  %v173_v30 = vld [vmem:[#allocation9 + $0x98] sm:$0xff]  ;;  %v250_v31 = vld [vmem:[#allocation10 + $0x90] sm:$0xff] }
  0x21   :  { %190 = vmatpush.msra.mxu0 %v176_v20  ;;  %213 = vmatpush.msra.mxu1 %v177_v21  ;;  %v251_v32 = vld [vmem:[#allocation10 + $0x98] sm:$0xff]  ;;  %v170_v33 = vld [vmem:[#allocation9 + $0x80] sm:$0xff]  ;;  %v171_v34 = vld [vmem:[#allocation9 + $0x88] sm:$0xff]  ;;  %v111_v54 = vsub.f32 1.0, %v110_v45 }
  0x22   :  { %107 = vadd.xlane.f32.xlu0 %v104_v15  ;;  %268 = vmatpush.msra.mxu2 %v254_v22  ;;  %v248_v35 = vld [vmem:[#allocation10 + $0x80] sm:$0xff]  ;;  %v249_v36 = vld [vmem:[#allocation10 + $0x88] sm:$0xff]  ;;  %v168_v38 = vld [vmem:[#allocation9 + $0x70] sm:$0xff] }
  0x23   :  { %291 = vmatpush.msra.mxu3 %v255_v23  ;;  %191 = vmatpush.msra.mxu0 %v174_v25  ;;  %v169_v39 = vld [vmem:[#allocation9 + $0x78] sm:$0xff]  ;;  %v246_v40 = vld [vmem:[#allocation10 + $0x70] sm:$0xff]  ;;  %v166_v42 = vld [vmem:[#allocation9 + $0x60] sm:$0xff]  ;;  %v112_v63 = vmul.f32 %v746_v37, %v111_v54 }
  0x24   :  { %214 = vmatpush.msra.mxu1 %v175_v26  ;;  %269 = vmatpush.msra.mxu2 %v252_v27  ;;  %v247_v41 = vld [vmem:[#allocation10 + $0x78] sm:$0xff]  ;;  %v167_v43 = vld [vmem:[#allocation9 + $0x68] sm:$0xff]  ;;  %v244_v44 = vld [vmem:[#allocation10 + $0x60] sm:$0xff] }
  0x25   :  { %292 = vmatpush.msra.mxu3 %v253_v28  ;;  %192 = vmatpush.msra.mxu0 %v172_v29  ;;  %v245_v46 = vld [vmem:[#allocation10 + $0x68] sm:$0xff]  ;;  %v164_v47 = vld [vmem:[#allocation9 + $0x50] sm:$0xff]  ;;  %v165_v48 = vld [vmem:[#allocation9 + $0x58] sm:$0xff]  ;;  %v113_v10 = vadd.f32 %v746_v37, %v112_v63 }
  0x26   :  { %215 = vmatpush.msra.mxu1 %v173_v30  ;;  %270 = vmatpush.msra.mxu2 %v250_v31  ;;  %v242_v49 = vld [vmem:[#allocation10 + $0x50] sm:$0xff]  ;;  %v243_v50 = vld [vmem:[#allocation10 + $0x58] sm:$0xff]  ;;  %v162_v51 = vld [vmem:[#allocation9 + $0x40] sm:$0xff] }
  0x27   :  { %293 = vmatpush.msra.mxu3 %v251_v32  ;;  %193 = vmatpush.msra.mxu0 %v170_v33  ;;  %v163_v52 = vld [vmem:[#allocation9 + $0x48] sm:$0xff]  ;;  %v240_v53 = vld [vmem:[#allocation10 + $0x40] sm:$0xff]  ;;  %v160_v56 = vld [vmem:[#allocation9 + $0x30] sm:$0xff]  ;;  %v115_v12 = vsel %vm114_vm0, %v746_v37, %v113_v10 }
  0x28   :  { %216 = vmatpush.msra.mxu1 %v171_v34  ;;  %271 = vmatpush.msra.mxu2 %v248_v35  ;;  %v241_v55 = vld [vmem:[#allocation10 + $0x48] sm:$0xff]  ;;  %v161_v57 = vld [vmem:[#allocation9 + $0x38] sm:$0xff]  ;;  %v238_v58 = vld [vmem:[#allocation10 + $0x30] sm:$0xff] }
  0x29   :  { %294 = vmatpush.msra.mxu3 %v249_v36  ;;  %194 = vmatpush.msra.mxu0 %v168_v38  ;;  %v239_v59 = vld [vmem:[#allocation10 + $0x38] sm:$0xff]  ;;  %v158_v60 = vld [vmem:[#allocation9 + $0x20] sm:$0xff]  ;;  %v159_v61 = vld [vmem:[#allocation9 + $0x28] sm:$0xff] }
  0x2a   :  { %217 = vmatpush.msra.mxu1 %v169_v39  ;;  %272 = vmatpush.msra.mxu2 %v246_v40  ;;  %v236_v62 = vld [vmem:[#allocation10 + $0x20] sm:$0xff]  ;;  %v237_v1 = vld [vmem:[#allocation10 + $0x28] sm:$0xff]  ;;  %v156_v2 = vld [vmem:[#allocation9 + $0x10] sm:$0xff] }
  0x2b   :  { %295 = vmatpush.msra.mxu3 %v247_v41  ;;  %195 = vmatpush.msra.mxu0 %v166_v42  ;;  %v157_v3 = vld [vmem:[#allocation9 + $0x18] sm:$0xff]  ;;  %v234_v4 = vld [vmem:[#allocation10 + $0x10] sm:$0xff]  ;;  %v154_v7 = vld [vmem:[#allocation9] sm:$0xff] }
  0x2c   :  { %218 = vmatpush.msra.mxu1 %v167_v43  ;;  %273 = vmatpush.msra.mxu2 %v244_v44  ;;  %v235_v5 = vld [vmem:[#allocation10 + $0x18] sm:$0xff]  ;;  %v155_v8 = vld [vmem:[#allocation9 + $0x8] sm:$0xff]  ;;  %v232_v9 = vld [vmem:[#allocation10] sm:$0xff] }
  0x2d   :  { %296 = vmatpush.msra.mxu3 %v245_v46  ;;  %196 = vmatpush.msra.mxu0 %v164_v47  ;;  %v233_v11 = vld [vmem:[#allocation10 + $0x8] sm:$0xff]  ;;  %v367_v16 = vld [vmem:[#allocation12 + $0x78] sm:$0xff]  ;;  %v366_v18 = vld [vmem:[#allocation12 + $0x70] sm:$0xff] }
  0x2e   :  { %219 = vmatpush.msra.mxu1 %v165_v48  ;;  %274 = vmatpush.msra.mxu2 %v242_v49  ;;  %v383_v17 = vld [vmem:[#allocation12 + $0xf8] sm:$0xff]  ;;  %v382_v19 = vld [vmem:[#allocation12 + $0xf0] sm:$0xff]  ;;  %v365_v20 = vld [vmem:[#allocation12 + $0x68] sm:$0xff] }
  0x2f   :  { %297 = vmatpush.msra.mxu3 %v243_v50  ;;  %197 = vmatpush.msra.mxu0 %v162_v51  ;;  %v381_v21 = vld [vmem:[#allocation12 + $0xe8] sm:$0xff]  ;;  %v364_v23 = vld [vmem:[#allocation12 + $0x60] sm:$0xff]  ;;  %v509_v35 = vld [vmem:[#allocation7] ss:$0 sm:$0xff] }
  0x30   :  { %220 = vmatpush.msra.mxu1 %v163_v52  ;;  %275 = vmatpush.msra.mxu2 %v240_v53  ;;  %v380_v24 = vld [vmem:[#allocation12 + $0xe0] sm:$0xff]  ;;  %v363_v46 = vld [vmem:[#allocation12 + $0x58] sm:$0xff]  ;;  %v362_v48 = vld [vmem:[#allocation12 + $0x50] sm:$0xff] }
  0x31   :  { %298 = vmatpush.msra.mxu3 %v241_v55  ;;  %198 = vmatpush.msra.mxu0 %v160_v56  ;;  %v379_v47 = vld [vmem:[#allocation12 + $0xd8] sm:$0xff]  ;;  %v378_v49 = vld [vmem:[#allocation12 + $0xd0] sm:$0xff]  ;;  %v361_v50 = vld [vmem:[#allocation12 + $0x48] sm:$0xff] }
  0x32   :  { %221 = vmatpush.msra.mxu1 %v161_v57  ;;  %276 = vmatpush.msra.mxu2 %v238_v58  ;;  %v377_v51 = vld [vmem:[#allocation12 + $0xc8] sm:$0xff]  ;;  %v360_v52 = vld [vmem:[#allocation12 + $0x40] sm:$0xff]  ;;  %v359_v54 = vld [vmem:[#allocation12 + $0x38] sm:$0xff] }
  0x33   :  { %299 = vmatpush.msra.mxu3 %v239_v59  ;;  %199 = vmatpush.msra.mxu0 %v158_v60  ;;  %v376_v53 = vld [vmem:[#allocation12 + $0xc0] sm:$0xff]  ;;  %v375_v55 = vld [vmem:[#allocation12 + $0xb8] sm:$0xff]  ;;  %v358_v56 = vld [vmem:[#allocation12 + $0x30] sm:$0xff] }
  0x34   :  { %222 = vmatpush.msra.mxu1 %v159_v61  ;;  %277 = vmatpush.msra.mxu2 %v236_v62  ;;  %v374_v57 = vld [vmem:[#allocation12 + $0xb0] sm:$0xff]  ;;  %v357_v58 = vld [vmem:[#allocation12 + $0x28] sm:$0xff]  ;;  %v356_v60 = vld [vmem:[#allocation12 + $0x20] sm:$0xff] }
  0x35   :  { %300 = vmatpush.msra.mxu3 %v237_v1  ;;  %200 = vmatpush.msra.mxu0 %v156_v2  ;;  %v373_v59 = vld [vmem:[#allocation12 + $0xa8] sm:$0xff]  ;;  %v372_v61 = vld [vmem:[#allocation12 + $0xa0] sm:$0xff]  ;;  %v355_v62 = vld [vmem:[#allocation12 + $0x18] sm:$0xff] }
  0x36   :  { %223 = vmatpush.msra.mxu1 %v157_v3  ;;  %278 = vmatpush.msra.mxu2 %v234_v4  ;;  %v371_v63 = vld [vmem:[#allocation12 + $0x98] sm:$0xff]  ;;  %v354_v1 = vld [vmem:[#allocation12 + $0x10] sm:$0xff]  ;;  %v353_v3 = vld [vmem:[#allocation12 + $0x8] sm:$0xff] }
  0x37   :  { %301 = vmatpush.msra.mxu3 %v235_v5  ;;  %201 = vmatpush.msra.mxu0 %v154_v7  ;;  %v370_v2 = vld [vmem:[#allocation12 + $0x90] sm:$0xff]  ;;  %v369_v4 = vld [vmem:[#allocation12 + $0x88] sm:$0xff]  ;;  %v352_v5 = vld [vmem:[#allocation12] sm:$0xff] }
  0x38   :  { %224 = vmatpush.msra.mxu1 %v155_v8  ;;  %279 = vmatpush.msra.mxu2 %v232_v9  ;;  %v368_v7 = vld [vmem:[#allocation12 + $0x80] sm:$0xff] }
  0x39   :  { %302 = vmatpush.msra.mxu3 %v233_v11  ;;  %384 = vmatpush.msrb.mxu0 %v367_v16 }
  0x3a   :  { %407 = vmatpush.msrb.mxu1 %v383_v17  ;;  %466 = vmatpush.msrb.mxu2 %v367_v16 }
  0x3b   :  { %482 = vmatpush.msrb.mxu3 %v383_v17  ;;  %385 = vmatpush.msrb.mxu0 %v366_v18 }
  0x3c   :  { %408 = vmatpush.msrb.mxu1 %v382_v19  ;;  %467 = vmatpush.msrb.mxu2 %v366_v18 }
  0x3d   :  { %483 = vmatpush.msrb.mxu3 %v382_v19  ;;  %386 = vmatpush.msrb.mxu0 %v365_v20 }
  0x3e   :  { %409 = vmatpush.msrb.mxu1 %v381_v21  ;;  %468 = vmatpush.msrb.mxu2 %v365_v20 }
  0x3f   :  { %484 = vmatpush.msrb.mxu3 %v381_v21  ;;  %387 = vmatpush.msrb.mxu0 %v364_v23 }
  0x40   :  { %410 = vmatpush.msrb.mxu1 %v380_v24  ;;  %469 = vmatpush.msrb.mxu2 %v364_v23 }
  0x41   :  { %485 = vmatpush.msrb.mxu3 %v380_v24  ;;  %388 = vmatpush.msrb.mxu0 %v363_v46 }
  0x42   :  { %411 = vmatpush.msrb.mxu1 %v379_v47  ;;  %470 = vmatpush.msrb.mxu2 %v363_v46 }
  0x43   :  { %486 = vmatpush.msrb.mxu3 %v379_v47  ;;  %389 = vmatpush.msrb.mxu0 %v362_v48 }
  0x44   :  { %412 = vmatpush.msrb.mxu1 %v378_v49  ;;  %471 = vmatpush.msrb.mxu2 %v362_v48 }
  0x45   :  { %487 = vmatpush.msrb.mxu3 %v378_v49  ;;  %390 = vmatpush.msrb.mxu0 %v361_v50 }
  0x46   :  { %413 = vmatpush.msrb.mxu1 %v377_v51  ;;  %472 = vmatpush.msrb.mxu2 %v361_v50 }
  0x47   :  { %488 = vmatpush.msrb.mxu3 %v377_v51  ;;  %391 = vmatpush.msrb.mxu0 %v360_v52 }
  0x48   :  { %414 = vmatpush.msrb.mxu1 %v376_v53  ;;  %473 = vmatpush.msrb.mxu2 %v360_v52 }
  0x49   :  { %489 = vmatpush.msrb.mxu3 %v376_v53  ;;  %392 = vmatpush.msrb.mxu0 %v359_v54 }
  0x4a   :  { %415 = vmatpush.msrb.mxu1 %v375_v55  ;;  %474 = vmatpush.msrb.mxu2 %v359_v54 }
  0x4b   :  { %490 = vmatpush.msrb.mxu3 %v375_v55  ;;  %393 = vmatpush.msrb.mxu0 %v358_v56 }
  0x4c   :  { %416 = vmatpush.msrb.mxu1 %v374_v57  ;;  %475 = vmatpush.msrb.mxu2 %v358_v56 }
  0x4d   :  { %491 = vmatpush.msrb.mxu3 %v374_v57  ;;  %394 = vmatpush.msrb.mxu0 %v357_v58 }
  0x4e   :  { %417 = vmatpush.msrb.mxu1 %v373_v59  ;;  %476 = vmatpush.msrb.mxu2 %v357_v58 }
  0x4f   :  { %492 = vmatpush.msrb.mxu3 %v373_v59  ;;  %395 = vmatpush.msrb.mxu0 %v356_v60 }
  0x50   :  { %418 = vmatpush.msrb.mxu1 %v372_v61  ;;  %477 = vmatpush.msrb.mxu2 %v356_v60 }
  0x51   :  { %493 = vmatpush.msrb.mxu3 %v372_v61  ;;  %396 = vmatpush.msrb.mxu0 %v355_v62 }
  0x52   :  { %419 = vmatpush.msrb.mxu1 %v371_v63  ;;  %478 = vmatpush.msrb.mxu2 %v355_v62 }
  0x53   :  { %494 = vmatpush.msrb.mxu3 %v371_v63  ;;  %397 = vmatpush.msrb.mxu0 %v354_v1 }
  0x54   :  { %420 = vmatpush.msrb.mxu1 %v370_v2  ;;  %479 = vmatpush.msrb.mxu2 %v354_v1 }
  0x55   :  { %495 = vmatpush.msrb.mxu3 %v370_v2  ;;  %398 = vmatpush.msrb.mxu0 %v353_v3 }
  0x56   :  { %421 = vmatpush.msrb.mxu1 %v369_v4  ;;  %480 = vmatpush.msrb.mxu2 %v353_v3 }
  0x57   :  { %496 = vmatpush.msrb.mxu3 %v369_v4  ;;  %399 = vmatpush.msrb.mxu0 %v352_v5 }
  0x58   :  { %422 = vmatpush.msrb.mxu1 %v368_v7  ;;  %481 = vmatpush.msrb.mxu2 %v352_v5 }
  0x59   :  { %497 = vmatpush.msrb.mxu3 %v368_v7 }
  0x8d   :  { %v106_v13 = vpop.xlane.xlu0 %105 }
  0x8e   :  { %v116_v14 = vmul.f32 %v115_v12, %v106_v13 }
  0x90   :  { %v118_v15 = vadd.f32 1e-06, %v116_v14 }
  0x92   :  { %512 = vrsqrt.f32 %v118_v15  ;;  %vm126_vm2 = vweird.f32 %v118_v15 }
  0x95   :  { %v108_v22 = vpop.xlane.xlu0 %107 }
  0x96   :  { %v117_v25 = vmul.f32 %v115_v12, %v108_v22 }
  0x98   :  { %v513_v26 = vpop.eup %512  ;;  %v119_v27 = vadd.f32 1e-06, %v117_v25 }
  0x99   :  { %v121_v28 = vmul.f32 %v513_v26, %v118_v15  ;;  %vm127_vm1 = vweird.f32 %v513_v26 }
  0x9a   :  { %514 = vrsqrt.f32 %v119_v27  ;;  %vm128_vm3 = vmor %vm126_vm2, %vm127_vm1  ;;  %vm136_vm5 = vweird.f32 %v119_v27 }
  0x9b   :  { %v122_v29 = vmul.f32 %v513_v26, %v121_v28 }
  0x9d   :  { %v123_v30 = vmul.f32 0.5, %v122_v29 }
  0x9f   :  { %v124_v31 = vsub.f32 1.5, %v123_v30 }
  0xa0   :  { %v515_v32 = vpop.eup %514 }
  0xa1   :  { %v125_v33 = vmul.f32 %v513_v26, %v124_v31  ;;  %v131_v34 = vmul.f32 %v515_v32, %v119_v27  ;;  %vm137_vm4 = vweird.f32 %v515_v32 }
  0xa2   :  { %vm138_vm6 = vmor %vm136_vm5, %vm137_vm4 }
  0xa3   :  { %v129_v36 = vsel %vm128_vm3, %v513_v26, %v125_v33  ;;  %v132_v37 = vmul.f32 %v515_v32, %v131_v34 }
  0xa4   :  { %v140_v38 = vmul.f32 %v129_v36, %v738_v0 }
  0xa5   :  { %v133_v39 = vmul.f32 0.5, %v132_v37 }
  0xa6   :  { %v146_v40 = vmul.f32 %v509_v35, %v140_v38 }
  0xa7   :  { %v134_v41 = vsub.f32 1.5, %v133_v39 }
  0xa8   :  { %202 = vmatmul.f32.vlgmr.msra.gmra.mxu0 %v146_v40  ;;  %225 = vmatmul.f32.vlgmr.msra.gmra.mxu1 %v146_v40 }
  0xa9   :  { %v135_v42 = vmul.f32 %v515_v32, %v134_v41  ;;  %280 = vmatmul.f32.vlgmr.msra.gmra.mxu2 %v146_v40  ;;  %303 = vmatmul.f32.vlgmr.msra.gmra.mxu3 %v146_v40 }
  0xab   :  { %v139_v43 = vsel %vm138_vm6, %v515_v32, %v135_v42 }
  0xac   :  { %v141_v44 = vmul.f32 %v139_v43, %v742_v6 }
  0xae   :  { %v147_v45 = vmul.f32 %v509_v35, %v141_v44 }
  0xb0   :  { %205 = vmatmul.f32.gmra.mxu0 %v147_v45  ;;  %228 = vmatmul.f32.gmra.mxu1 %v147_v45 }
  0xb1   :  { %283 = vmatmul.f32.gmra.mxu2 %v147_v45  ;;  %306 = vmatmul.f32.gmra.mxu3 %v147_v45 }
 0x125   :  { %v203_v8 = vpop.f32.mrf.mxu0  ;;  %v226_v9 = vpop.f32.mrf.mxu1 }
 0x126   :  { %v314_v10 = vmul.f32 0.044715, %v203_v8  ;;  %v315_v11 = vmul.f32 0.044715, %v226_v9  ;;  %v310_v33 = vmul.f32 0.5, %v203_v8  ;;  %v311_v37 = vmul.f32 0.5, %v226_v9 }
 0x128   :  { %v318_v12 = vmul.f32 %v314_v10, %v203_v8  ;;  %v319_v13 = vmul.f32 %v315_v11, %v226_v9 }
 0x12a   :  { %v322_v14 = vmul.f32 %v318_v12, %v203_v8  ;;  %v323_v15 = vmul.f32 %v319_v13, %v226_v9 }
 0x12c   :  { %v326_v16 = vadd.f32 %v322_v14, %v203_v8  ;;  %v327_v17 = vadd.f32 %v323_v15, %v226_v9  ;;  %v281_v36 = vpop.f32.mrf.mxu2  ;;  %v304_v40 = vpop.f32.mrf.mxu3 }
 0x12d   :  { %v206_v18 = vpop.f32.mrf.mxu0  ;;  %v229_v19 = vpop.f32.mrf.mxu1 }
 0x12e   :  { %v330_v20 = vmul.f32 0.7978846, %v326_v16  ;;  %v331_v21 = vmul.f32 0.7978846, %v327_v17  ;;  %v316_v22 = vmul.f32 0.044715, %v206_v18 }
 0x12f   :  { %v317_v23 = vmul.f32 0.044715, %v229_v19  ;;  %v312_v46 = vmul.f32 0.5, %v206_v18  ;;  %v313_v48 = vmul.f32 0.5, %v229_v19 }
 0x130   :  { %516 = vtanh.f32 %v330_v20  ;;  %v320_v24 = vmul.f32 %v316_v22, %v206_v18 }
 0x131   :  { %518 = vtanh.f32 %v331_v21  ;;  %v321_v25 = vmul.f32 %v317_v23, %v229_v19 }
 0x132   :  { %v324_v26 = vmul.f32 %v320_v24, %v206_v18 }
 0x133   :  { %v325_v27 = vmul.f32 %v321_v25, %v229_v19 }
 0x134   :  { %v328_v28 = vadd.f32 %v324_v26, %v206_v18  ;;  %v284_v51 = vpop.f32.mrf.mxu2  ;;  %v307_v54 = vpop.f32.mrf.mxu3 }
 0x135   :  { %v329_v29 = vadd.f32 %v325_v27, %v229_v19 }
 0x136   :  { %v517_v30 = vpop.eup %516  ;;  %v332_v31 = vmul.f32 0.7978846, %v328_v28 }
 0x137   :  { %v519_v32 = vpop.eup %518  ;;  %v338_v34 = vadd.f32 1.0, %v517_v30  ;;  %v333_v35 = vmul.f32 0.7978846, %v329_v29 }
 0x138   :  { %v339_v38 = vadd.f32 1.0, %v519_v32  ;;  %520 = vtanh.f32 %v332_v31 }
 0x139   :  { %v342_v39 = vmul.f32 %v338_v34, %v310_v33  ;;  %522 = vtanh.f32 %v333_v35 }
 0x13a   :  { %v343_v41 = vmul.f32 %v339_v38, %v311_v37 }
 0x13b   :  { %v346_v42 = vmul.f32 %v342_v39, %v281_v36 }
 0x13c   :  { %v347_v43 = vmul.f32 %v343_v41, %v304_v40 }
 0x13d   :  { %400 = vmatmul.f32.vlgmr.msrb.gmra.mxu0 %v346_v42 }
 0x13e   :  { %v521_v44 = vpop.eup %520  ;;  %423 = vmatmul.f32.vlgmr.msrb.gmra.mxu1 %v347_v43 }
 0x13f   :  { %v523_v45 = vpop.eup %522  ;;  %v340_v47 = vadd.f32 1.0, %v521_v44 }
 0x140   :  { %v341_v49 = vadd.f32 1.0, %v523_v45 }
 0x141   :  { %v344_v50 = vmul.f32 %v340_v47, %v312_v46 }
 0x142   :  { %v345_v52 = vmul.f32 %v341_v49, %v313_v48 }
 0x143   :  { %v348_v53 = vmul.f32 %v344_v50, %v284_v51 }
 0x144   :  { %v349_v55 = vmul.f32 %v345_v52, %v307_v54 }
 0x145   :  { %403 = vmatmul.f32.vlgmr.msrb.gmra.mxu2 %v348_v53 }
 0x146   :  { %426 = vmatmul.f32.vlgmr.msrb.gmra.mxu3 %v349_v55 }
 0x1ba   :  { %v401_v56 = vpop.f32.mrf.mxu0 }
 0x1bb   :  { %v424_v57 = vpop.f32.mrf.mxu1 }
 0x1bc   :  { %v425_v58 = vadd.f32 %v424_v57, %v401_v56 }
 0x1be   :  { %v441_v59 = vadd.f32 %v425_v58, %v738_v0 }
 0x1c0   :  { %443 = vst [vmem:[#allocation13] sm:$0xff] %v441_v59 }
 0x1c8   :  { %v404_v60 = vpop.f32.mrf.mxu2 }
 0x1c9   :  { %v427_v61 = vpop.f32.mrf.mxu3 }
 0x1ca   :  { %v428_v62 = vadd.f32 %v427_v61, %v404_v60 }
 0x1cc   :  { %v442_v63 = vadd.f32 %v428_v62, %v742_v6 }
 0x1ce   :  { %444 = vst [vmem:[#allocation13 + $0x8] sm:$0xff] %v442_v63 }
 0x1cf   :  { %457 = dma.vmem_to_hbm [thread:$0]  %s450_s4, 256, %s452_s21, [#allocation6], %s681_s3, %s681_s3, %s682_s12  }
 0x1d0   :  { %674 = dma.done.wait [#allocation6], 256  }
 0x1d1   :  { %675 = vsyncadd [#allocation6], 4294967040 }
 0x1d2   :  { %462 = vsyncpa [#allocation5], 1 }
 0x1d3   :  { %463 = vsyncpa [#allocation8], 1 }
 0x1d4   :  { %464 = vsyncpa [#allocation11], 1 }
 0x1d5   :  { %465 = vsyncpa [#allocation6], 1 }

</bundles_post_ra>
